<compile_context>
chip_gen: v7x
topology: tpu7x:2x2x1
jax: 0.10.0
libtpu: 0.0.40
codegen_flags: <defaults>
</compile_context>

<pallas_src>
import numpy as np
import jax
import jax.numpy as jnp
from jax import lax
from jax.experimental import pallas as pl
from jax.experimental.pallas import tpu as pltpu

NEG_INF = -1.0e30   # finite stand-in for the module's NEG_INF sentinel
LANE = 128


def _logaddexp(a, b):
    mx = jnp.maximum(a, b)
    return mx + jnp.log1p(jnp.exp(-jnp.abs(a - b)))


def _ctc_step_kernel(meta_ref, pblank_ref,
                     prob_c_ref, gn_g_ref, gb_g_ref,
                     rep_ref, score_prev_ref, eos_ref, gnb_ref,
                     gn_h_ref, gb_h_ref, score_ref, delta_ref,
                     phi_ref):
    """One CtcScorer.forward step for one 128-lane block of hypotheses.

    meta_ref       : (2,)   SMEM int32  [start, glen]
    pblank_ref     : (T,)   SMEM f32    ctc_prob[:, blank]
    prob_c_ref     : (T, L) VMEM f32    ctc_prob gathered at candidate tokens c
    gn_g_ref       : (T, L) VMEM f32    gamma_n_g  (previous prefix, non-blank)
    gb_g_ref       : (T, L) VMEM f32    gamma_b_g  (previous prefix, blank)
    rep_ref        : (1, L) VMEM f32    1.0 where repeat_g[:, -1] != c
    score_prev_ref : (1, L) VMEM f32    previous ctc_score
    eos_ref        : (1, L) VMEM f32    1.0 where c == eos
    gnb_ref        : (1, L) VMEM f32    logaddexp(gamma_b_g[-1], gamma_n_g[-1])
    outputs        : gamma_n_h (T,L), gamma_b_h (T,L), score (1,L), delta (1,L)
    scratch        : phi (T, L) with phi[t] = logaddexp(gb_g[t], where(rep, gn_g[t], NEG))
    """
    T, L = gn_h_ref.shape
    neg = jnp.float32(NEG_INF)

    start = meta_ref[0]
    glen = meta_ref[1]

    # torch.zeros_like(gamma_*_h): rows < start - 1 must stay zero, rows
    # >= start - 1 are overwritten below, so one full-tile store suffices.
    gn_h_ref[...] = jnp.zeros_like(gn_h_ref)
    gb_h_ref[...] = jnp.zeros_like(gb_h_ref)

    rep = rep_ref[...] > 0.5                                   # (1, L) bool

    # ---- hoisted out of the serial loop: phi for every timestep ----------
    gn_g = gn_g_ref[...]                                       # (T, L)
    gb_g = gb_g_ref[...]                                       # (T, L)
    phi_all = _logaddexp(gb_g, jnp.where(rep, gn_g, neg))      # (T, L)
    phi_ref[...] = phi_all

    # init row (start - 1): ctc_prob[0, c] if glen == 0 else NEG_INF
    pc0 = prob_c_ref[pl.ds(0, 1), :]                           # (1, L)
    init_n = jnp.where(glen == 0, pc0, jnp.full_like(pc0, neg))
    init_b = jnp.full_like(init_n, neg)
    gn_h_ref[pl.ds(start - 1, 1), :] = init_n
    gb_h_ref[pl.ds(start - 1, 1), :] = init_b

    # ---- hoisted prefix score: logsumexp(init_n, phi[t-1]+prob_c[t]) -----
    # TODO(synk): for very long T, chunk this reduction (or add a T grid
    # axis) to bound the intermediate (T-1, L) value / VMEM residency.
    if T > 1:
        psi = phi_all[: T - 1, :] + prob_c_ref[pl.ds(1, T - 1), :]   # (T-1, L)
        s_iota = lax.broadcasted_iota(jnp.int32, (T - 1, L), 0)
        psi = jnp.where(s_iota >= start - 1, psi, neg)               # mask t < start
        m = jnp.maximum(jnp.max(psi, axis=0, keepdims=True), init_n)  # (1, L)
        ssum = (jnp.sum(jnp.exp(psi - m), axis=0, keepdims=True)
                + jnp.exp(init_n - m))
        score = m + jnp.log(ssum)
    else:
        score = init_n

    # ---- serial recursion: only the two gamma logaddexp chains remain ----
    def body(t, carry):
        gn_prev, gb_prev = carry
        phi_t = phi_ref[pl.ds(t - 1, 1), :]
        pc_t = prob_c_ref[pl.ds(t, 1), :]
        pb_t = pblank_ref[t]                                   # SMEM scalar
        gn_new = _logaddexp(gn_prev, phi_t) + pc_t
        gb_new = _logaddexp(gb_prev, gn_prev) + pb_t
        gn_h_ref[pl.ds(t, 1), :] = gn_new
        gb_h_ref[pl.ds(t, 1), :] = gb_new
        return gn_new, gb_new

    # dynamic lower bound (start lives in SMEM -> one compile for all U).
    # TODO(synk): with a static trip count this loop could be unrolled 4-8x.
    lax.fori_loop(start, T, body, (init_n, init_b))

    # eos candidates take the full-prefix score logaddexp(gb_g[-1], gn_g[-1])
    score = jnp.where(eos_ref[...] > 0.5, gnb_ref[...], score)

    score_ref[...] = score
    delta_ref[...] = score - score_prev_ref[...]


def ctc_scorer_forward(state, g, c, ctc_prob, eos=1):
    """Functional CtcScorer.forward.

    state = (ctc_score (1, B), gamma_n_g (T, B), gamma_b_g (T, B)), B == g.shape[0]
    g: (N, U) int32   c: (N * ctc_beam,) int32   ctc_prob: (T, V) log-probs
    Returns (delta_score (N, ctc_beam), new_state with width N*ctc_beam).
    """
    ctc_score, gamma_n_g, gamma_b_g = state
    N, U = g.shape
    W0 = c.shape[0]
    ctc_beam = W0 // N
    T, V = ctc_prob.shape

    # repeat_interleave of state / prefix to candidate width (glue).
    # TODO(synk): replicate gamma_n_g / gamma_b_g in-kernel (one-hot MXU
    # matmul or lane gather) to cut their HBM traffic by ctc_beam x.
    ctc_score_r = jnp.repeat(ctc_score, ctc_beam, axis=-1)      # (1, W0)
    gamma_n_g_r = jnp.repeat(gamma_n_g, ctc_beam, axis=-1)      # (T, W0)
    gamma_b_g_r = jnp.repeat(gamma_b_g, ctc_beam, axis=-1)      # (T, W0)
    repeat_g = jnp.repeat(g, ctc_beam, axis=0)                  # (W0, U)

    rep_mask = (repeat_g[:, -1] != c).astype(jnp.float32)[None, :]
    eos_mask = (c == eos).astype(jnp.float32)[None, :]
    # eos score computed once at native width B, then replicated (tiny).
    gnb_last = jnp.logaddexp(gamma_b_g[-1], gamma_n_g[-1])      # (B,)
    gnb_last = jnp.repeat(gnb_last[None, :], ctc_beam, axis=-1)  # (1, W0)

    # TODO(synk): the vocab gather could run in-kernel on the idle MXU as a
    # one-hot matmul per T-chunk instead of an XLA gather + HBM materialize.
    prob_c = jnp.take(ctc_prob, c, axis=1)                      # (T, W0)
    prob_blank = ctc_prob[:, -1]                                # (T,) blank = -1

    glen = U - 1
    start = max(glen, 1)
    meta = jnp.array([start, glen], dtype=jnp.int32)            # runtime scalars

    # pad the beam width up to a multiple of 128 lane-dense blocks
    Wp = ((W0 + LANE - 1) // LANE) * LANE
    pad = Wp - W0

    def padw(x, val=0.0):
        return jnp.pad(x, ((0, 0), (0, pad)), constant_values=val)

    prob_c_p = padw(prob_c)
    gn_g_p = padw(gamma_n_g_r, NEG_INF)
    gb_g_p = padw(gamma_b_g_r, NEG_INF)
    rep_p = padw(rep_mask)
    score_prev_p = padw(ctc_score_r)
    eos_p = padw(eos_mask)
    gnb_p = padw(gnb_last, NEG_INF)

    n_blk = Wp // LANE
    smem = pl.BlockSpec(memory_space=pltpu.MemorySpace.SMEM)
    big = pl.BlockSpec((T, LANE), lambda i: (0, i))
    row = pl.BlockSpec((1, LANE), lambda i: (0, i))

    # scheduler hints: per-block VMEM residency + cost of this long serial,
    # low-FLOP, transcendental-heavy kernel.
    blk_bytes = 4 * (6 * T * LANE + 6 * LANE + T + 2)
    vmem_limit = int(min(64 * 2 ** 20, max(16 * 2 ** 20, 4 * blk_bytes)))
    cost = pl.CostEstimate(
        flops=int(20 * T * Wp),
        transcendentals=int(7 * T * Wp),
        bytes_accessed=int(4 * (5 * T * Wp + 6 * Wp + T + 2)),
    )

    out_shapes = (
        jax.ShapeDtypeStruct((T, Wp), jnp.float32),   # gamma_n_h
        jax.ShapeDtypeStruct((T, Wp), jnp.float32),   # gamma_b_h
        jax.ShapeDtypeStruct((1, Wp), jnp.float32),   # new ctc_score
        jax.ShapeDtypeStruct((1, Wp), jnp.float32),   # score - old ctc_score
    )
    gn_h, gb_h, score, delta = pl.pallas_call(
        _ctc_step_kernel,
        out_shape=out_shapes,
        grid=(n_blk,),
        in_specs=[smem, smem, big, big, big, row, row, row, row],
        out_specs=(big, big, row, row),
        scratch_shapes=[pltpu.VMEM((T, LANE), jnp.float32)],   # phi
        compiler_params=pltpu.CompilerParams(
            dimension_semantics=("parallel",),
            vmem_limit_bytes=vmem_limit),
        cost_estimate=cost,
    )(meta, prob_blank, prob_c_p, gn_g_p, gb_g_p,
      rep_p, score_prev_p, eos_p, gnb_p)

    delta_score = delta[0, :W0].reshape(N, ctc_beam)
    new_state = (score[:, :W0], gn_h[:, :W0], gb_h[:, :W0])
    return delta_score, new_state


def reference_forward(state, g, c, ctc_prob, eos=1):
    """Pure-numpy replica of CtcScorer.forward for verification."""
    ctc_score, gn_g, gb_g = (np.asarray(x, np.float32) for x in state)
    ctc_prob = np.asarray(ctc_prob, np.float32)
    g = np.asarray(g)
    c = np.asarray(c)
    N, U = g.shape
    W = c.shape[0]
    ctc_beam = W // N
    T = ctc_prob.shape[0]

    def lae(a, b):
        m = np.maximum(a, b)
        return m + np.log1p(np.exp(-np.abs(a - b)))

    ctc_score = np.repeat(ctc_score, ctc_beam, axis=-1)
    gn_g = np.repeat(gn_g, ctc_beam, axis=-1)
    gb_g = np.repeat(gb_g, ctc_beam, axis=-1)
    repeat_g = np.repeat(g, ctc_beam, axis=0)

    gn_h = np.zeros_like(gn_g)
    gb_h = np.zeros_like(gn_g)
    glen = U - 1
    start = max(glen, 1)
    gn_h[start - 1] = ctc_prob[0, c] if glen == 0 else NEG_INF
    gb_h[start - 1] = NEG_INF
    score = gn_h[start - 1].copy()
    repeat = repeat_g[:, -1] != c
    for t in range(start, T):
        term = np.where(repeat, gn_g[t - 1], NEG_INF)
        phi = lae(gb_g[t - 1], term)
        gn_h[t] = lae(gn_h[t - 1], phi) + ctc_prob[t, c]
        gb_h[t] = lae(gb_h[t - 1], gn_h[t - 1]) + ctc_prob[t, -1]
        score = lae(score, phi + ctc_prob[t, c])
    is_eos = c == eos
    gnb_g = lae(gb_g[-1], gn_g[-1])
    score[is_eos] = gnb_g[is_eos]
    delta = (score - ctc_score.reshape(-1)).reshape(-1, ctc_beam)
    return delta, (score[None, :], gn_h, gb_h)


if __name__ == "__main__":
    key = jax.random.PRNGKey(0)
    T, V = 16, 32          # encoder frames x vocab (blank = V-1, eos = 1)
    N, ctc_beam = 2, 4     # batch x ctc beam
    eos = 1

    k1, k2, k3, k4, k5 = jax.random.split(key, 5)
    # deterministic synthetic "parameter": encoder CTC logits -> log-softmax
    ctc_prob = jax.nn.log_softmax(
        jax.random.normal(k1, (T, V), jnp.float32), axis=-1)

    # initial buffers exactly as in CtcScorer.__init__ (width = batch N)
    gamma_n_g = jnp.full((T, N), NEG_INF, jnp.float32)
    gamma_b_g = jnp.cumsum(jnp.broadcast_to(ctc_prob[:, -1:], (T, N)), axis=0)
    ctc_score = jnp.zeros((1, N), jnp.float32)
    state = (ctc_score, gamma_n_g, gamma_b_g)

    # ---- step 1: prefixes of length 1 (glen == 0 branch) ----
    g1 = jax.random.randint(k2, (N, 1), 0, V, dtype=jnp.int32)
    c1 = jax.random.randint(k3, (N * ctc_beam,), 0, V, dtype=jnp.int32)
    c1 = c1.at[0].set(eos)   # make sure eos path is exercised

    delta1, state1 = ctc_scorer_forward(state, g1, c1, ctc_prob, eos=eos)
    jax.block_until_ready(delta1)
    ref_delta1, ref_state1 = reference_forward(state, g1, c1, ctc_prob, eos=eos)
    assert np.allclose(np.asarray(delta1), ref_delta1, rtol=1e-3, atol=1e-3)

    # ---- step 2: wider state, glen > 0 branch ----
    W1 = N * ctc_beam
    beam2 = 2
    g2 = jax.random.randint(k4, (W1, 2), 0, V, dtype=jnp.int32)
    c2 = jax.random.randint(k5, (W1 * beam2,), 0, V, dtype=jnp.int32)
    c2 = c2.at[1].set(eos)

    delta2, state2 = ctc_scorer_forward(state1, g2, c2, ctc_prob, eos=eos)
    jax.block_until_ready(delta2)
    ref_delta2, _ = reference_forward(ref_state1, g2, c2, ctc_prob, eos=eos)
    assert np.allclose(np.asarray(delta2), ref_delta2, rtol=1e-3, atol=1e-3)

    print("KERNEL_OK")
</pallas_src>

<mosaic_0001>
module attributes {stable_mosaic.version = 11 : i64} {
  func.func @_ctc_step_kernel(%arg0: i32, %arg1: memref<2xi32, #tpu.memory_space<smem>>, %arg2: memref<16xf32, #tpu.memory_space<smem>>, %arg3: memref<16x128xf32, #tpu.memory_space<vmem>>, %arg4: memref<16x128xf32, #tpu.memory_space<vmem>>, %arg5: memref<16x128xf32, #tpu.memory_space<vmem>>, %arg6: memref<1x128xf32, #tpu.memory_space<vmem>>, %arg7: memref<1x128xf32, #tpu.memory_space<vmem>>, %arg8: memref<1x128xf32, #tpu.memory_space<vmem>>, %arg9: memref<1x128xf32, #tpu.memory_space<vmem>>, %arg10: memref<16x128xf32, #tpu.memory_space<vmem>>, %arg11: memref<16x128xf32, #tpu.memory_space<vmem>>, %arg12: memref<1x128xf32, #tpu.memory_space<vmem>>, %arg13: memref<1x128xf32, #tpu.memory_space<vmem>>, %arg14: memref<16x128xf32, #tpu.memory_space<vmem>>) attributes {dimension_semantics = [#tpu.dimension_semantics<parallel>], iteration_bounds = array<i64: 1>, scalar_prefetch = 0 : i64, scratch_operands = 1 : i64, tpu.core_type = #tpu.core_type<tc>, window_params = [{transform_indices = @transform_0, window_bounds = array<i64: 2>}, {transform_indices = @transform_1, window_bounds = array<i64: 16>}, {transform_indices = @transform_2, window_bounds = array<i64: 16, 128>}, {transform_indices = @transform_3, window_bounds = array<i64: 16, 128>}, {transform_indices = @transform_4, window_bounds = array<i64: 16, 128>}, {transform_indices = @transform_5, window_bounds = array<i64: 1, 128>}, {transform_indices = @transform_6, window_bounds = array<i64: 1, 128>}, {transform_indices = @transform_7, window_bounds = array<i64: 1, 128>}, {transform_indices = @transform_8, window_bounds = array<i64: 1, 128>}, {transform_indices = @transform_9, window_bounds = array<i64: 16, 128>}, {transform_indices = @transform_10, window_bounds = array<i64: 16, 128>}, {transform_indices = @transform_11, window_bounds = array<i64: 1, 128>}, {transform_indices = @transform_12, window_bounds = array<i64: 1, 128>}]} {
    %c0 = arith.constant 0 : index
    %0 = memref.load %arg1[%c0] : memref<2xi32, #tpu.memory_space<smem>>
    %c1 = arith.constant 1 : index
    %1 = memref.load %arg1[%c1] : memref<2xi32, #tpu.memory_space<smem>>
    %cst = arith.constant 0.000000e+00 : f32
    %2 = vector.broadcast %cst : f32 to vector<16x128xf32>
    %c0_0 = arith.constant 0 : index
    %c0_1 = arith.constant 0 : index
    %3 = vector.load %arg10[%c0_0, %c0_1] : memref<16x128xf32, #tpu.memory_space<vmem>>, vector<16x128xf32>
    tpu.vector_store %arg10[%c0_0, %c0_1], %2 {strides = array<i32>} : memref<16x128xf32, #tpu.memory_space<vmem>>, vector<16x128xf32>,
    %cst_2 = arith.constant 0.000000e+00 : f32
    %4 = vector.broadcast %cst_2 : f32 to vector<16x128xf32>
    %c0_3 = arith.constant 0 : index
    %c0_4 = arith.constant 0 : index
    %5 = vector.load %arg11[%c0_3, %c0_4] : memref<16x128xf32, #tpu.memory_space<vmem>>, vector<16x128xf32>
    tpu.vector_store %arg11[%c0_3, %c0_4], %4 {strides = array<i32>} : memref<16x128xf32, #tpu.memory_space<vmem>>, vector<16x128xf32>,
    %c0_5 = arith.constant 0 : index
    %c0_6 = arith.constant 0 : index
    %6 = vector.load %arg6[%c0_5, %c0_6] : memref<1x128xf32, #tpu.memory_space<vmem>>, vector<1x128xf32>
    %cst_7 = arith.constant 5.000000e-01 : f32
    %7 = vector.broadcast %cst_7 : f32 to vector<1x128xf32>
    %8 = arith.cmpf ogt, %6, %7 : vector<1x128xf32>
    %c0_8 = arith.constant 0 : index
    %c0_9 = arith.constant 0 : index
    %9 = vector.load %arg4[%c0_8, %c0_9] : memref<16x128xf32, #tpu.memory_space<vmem>>, vector<16x128xf32>
    %c0_10 = arith.constant 0 : index
    %c0_11 = arith.constant 0 : index
    %10 = vector.load %arg5[%c0_10, %c0_11] : memref<16x128xf32, #tpu.memory_space<vmem>>, vector<16x128xf32>
    %cst_12 = arith.constant -1.000000e+30 : f32
    %11 = vector.shape_cast %8 : vector<1x128xi1> to vector<1x128xi1>
    %12 = vector.broadcast %11 : vector<1x128xi1> to vector<16x128xi1>
    %13 = vector.broadcast %cst_12 : f32 to vector<16x128xf32>
    %14 = arith.select %12, %9, %13 : vector<16x128xi1>, vector<16x128xf32>
    %15 = arith.maximumf %10, %14 : vector<16x128xf32>
    %16 = arith.subf %10, %14 : vector<16x128xf32>
    %17 = math.absf %16 : vector<16x128xf32>
    %cst_13 = arith.constant 0.000000e+00 : f32
    %18 = vector.broadcast %cst_13 : f32 to vector<16x128xf32>
    %19 = arith.subf %18, %17 : vector<16x128xf32>
    %20 = math.exp %19 : vector<16x128xf32>
    %21 = math.log1p %20 : vector<16x128xf32>
    %22 = arith.addf %15, %21 : vector<16x128xf32>
    %c0_14 = arith.constant 0 : index
    %c0_15 = arith.constant 0 : index
    %23 = vector.load %arg14[%c0_14, %c0_15] : memref<16x128xf32, #tpu.memory_space<vmem>>, vector<16x128xf32>
    tpu.vector_store %arg14[%c0_14, %c0_15], %22 {strides = array<i32>} : memref<16x128xf32, #tpu.memory_space<vmem>>, vector<16x128xf32>,
    %c0_16 = arith.constant 0 : index
    %c0_17 = arith.constant 0 : index
    %24 = vector.load %arg3[%c0_16, %c0_17] : memref<16x128xf32, #tpu.memory_space<vmem>>, vector<1x128xf32>
    %c0_i32 = arith.constant 0 : i32
    %25 = arith.cmpi eq, %1, %c0_i32 : i32
    %cst_18 = arith.constant -1.000000e+30 : f32
    %26 = vector.broadcast %cst_18 : f32 to vector<1x128xf32>
    %27 = arith.select %25, %24, %26 : vector<1x128xf32>
    %cst_19 = arith.constant -1.000000e+30 : f32
    %28 = vector.broadcast %cst_19 : f32 to vector<1x128xf32>
    %c1_i32 = arith.constant 1 : i32
    %29 = arith.subi %0, %c1_i32 : i32
    %30 = arith.index_cast %29 : i32 to index
    %c0_20 = arith.constant 0 : index
    %31 = vector.load %arg10[%30, %c0_20] : memref<16x128xf32, #tpu.memory_space<vmem>>, vector<1x128xf32>
    tpu.vector_store %arg10[%30, %c0_20], %27 {strides = array<i32>} : memref<16x128xf32, #tpu.memory_space<vmem>>, vector<1x128xf32>,
    %c1_i32_21 = arith.constant 1 : i32
    %32 = arith.subi %0, %c1_i32_21 : i32
    %33 = arith.index_cast %32 : i32 to index
    %c0_22 = arith.constant 0 : index
    %34 = vector.load %arg11[%33, %c0_22] : memref<16x128xf32, #tpu.memory_space<vmem>>, vector<1x128xf32>
    tpu.vector_store %arg11[%33, %c0_22], %28 {strides = array<i32>} : memref<16x128xf32, #tpu.memory_space<vmem>>, vector<1x128xf32>,
    %35 = vector.extract_strided_slice %22 {offsets = [0, 0], sizes = [15, 128], strides = [1, 1]} : vector<16x128xf32> to vector<15x128xf32>
    %c1_23 = arith.constant 1 : index
    %c0_24 = arith.constant 0 : index
    %36 = vector.load %arg3[%c1_23, %c0_24] : memref<16x128xf32, #tpu.memory_space<vmem>>, vector<15x128xf32>
    %37 = arith.addf %35, %36 : vector<15x128xf32>
    %38 = tpu.iota {dimensions = array<i32: 0>} : vector<15x128xi32>
    %c1_i32_25 = arith.constant 1 : i32
    %39 = arith.subi %0, %c1_i32_25 : i32
    %40 = vector.broadcast %39 : i32 to vector<15x128xi32>
    %41 = arith.cmpi sge, %38, %40 : vector<15x128xi32>
    %cst_26 = arith.constant -1.000000e+30 : f32
    %42 = vector.broadcast %cst_26 : f32 to vector<15x128xf32>
    %43 = arith.select %41, %37, %42 : vector<15x128xi1>, vector<15x128xf32>
    %cst_27 = arith.constant dense<0xFF800000> : vector<128xf32>
    %44 = vector.multi_reduction <maximumf>, %43, %cst_27 [0] : vector<15x128xf32> to vector<128xf32>
    %45 = vector.shape_cast %44 : vector<128xf32> to vector<1x128xf32>
    %46 = arith.maximumf %45, %27 : vector<1x128xf32>
    %47 = vector.broadcast %46 : vector<1x128xf32> to vector<15x128xf32>
    %48 = arith.subf %43, %47 : vector<15x128xf32>
    %49 = math.exp %48 : vector<15x128xf32>
    %cst_28 = arith.constant dense<0.000000e+00> : vector<128xf32>
    %50 = vector.multi_reduction <add>, %49, %cst_28 [0] : vector<15x128xf32> to vector<128xf32>
    %51 = vector.shape_cast %50 : vector<128xf32> to vector<1x128xf32>
    %52 = arith.subf %27, %46 : vector<1x128xf32>
    %53 = math.exp %52 : vector<1x128xf32>
    %54 = arith.addf %51, %53 : vector<1x128xf32>
    %55 = math.log %54 : vector<1x128xf32>
    %56 = arith.addf %46, %55 : vector<1x128xf32>
    %c16_i32 = arith.constant 16 : i32
    %57 = arith.subi %c16_i32, %0 : i32
    %58 = arith.addi %0, %57 : i32
    %c1_i32_29 = arith.constant 1 : i32
    %59:2 = scf.for %arg15 = %0 to %58 step %c1_i32_29 iter_args(%arg16 = %27, %arg17 = %28) -> (vector<1x128xf32>, vector<1x128xf32>)  : i32 {
      %c1_i32_41 = arith.constant 1 : i32
      %69 = arith.subi %arg15, %c1_i32_41 : i32
      %70 = arith.index_cast %69 : i32 to index
      %c0_42 = arith.constant 0 : index
      %71 = vector.load %arg14[%70, %c0_42] : memref<16x128xf32, #tpu.memory_space<vmem>>, vector<1x128xf32>
      %72 = arith.index_cast %arg15 : i32 to index
      %c0_43 = arith.constant 0 : index
      %73 = vector.load %arg3[%72, %c0_43] : memref<16x128xf32, #tpu.memory_space<vmem>>, vector<1x128xf32>
      %74 = arith.index_cast %arg15 : i32 to index
      %75 = memref.load %arg2[%74] : memref<16xf32, #tpu.memory_space<smem>>
      %76 = arith.maximumf %arg16, %71 : vector<1x128xf32>
      %77 = arith.subf %arg16, %71 : vector<1x128xf32>
      %78 = math.absf %77 : vector<1x128xf32>
      %cst_44 = arith.constant 0.000000e+00 : f32
      %79 = vector.broadcast %cst_44 : f32 to vector<1x128xf32>
      %80 = arith.subf %79, %78 : vector<1x128xf32>
      %81 = math.exp %80 : vector<1x128xf32>
      %82 = math.log1p %81 : vector<1x128xf32>
      %83 = arith.addf %76, %82 : vector<1x128xf32>
      %84 = arith.addf %83, %73 : vector<1x128xf32>
      %85 = arith.maximumf %arg17, %arg16 : vector<1x128xf32>
      %86 = arith.subf %arg17, %arg16 : vector<1x128xf32>
      %87 = math.absf %86 : vector<1x128xf32>
      %cst_45 = arith.constant 0.000000e+00 : f32
      %88 = vector.broadcast %cst_45 : f32 to vector<1x128xf32>
      %89 = arith.subf %88, %87 : vector<1x128xf32>
      %90 = math.exp %89 : vector<1x128xf32>
      %91 = math.log1p %90 : vector<1x128xf32>
      %92 = arith.addf %85, %91 : vector<1x128xf32>
      %93 = vector.broadcast %75 : f32 to vector<1x128xf32>
      %94 = arith.addf %92, %93 : vector<1x128xf32>
      %95 = arith.index_cast %arg15 : i32 to index
      %c0_46 = arith.constant 0 : index
      %96 = vector.load %arg10[%95, %c0_46] : memref<16x128xf32, #tpu.memory_space<vmem>>, vector<1x128xf32>
      tpu.vector_store %arg10[%95, %c0_46], %84 {strides = array<i32>} : memref<16x128xf32, #tpu.memory_space<vmem>>, vector<1x128xf32>,
      %97 = arith.index_cast %arg15 : i32 to index
      %c0_47 = arith.constant 0 : index
      %98 = vector.load %arg11[%97, %c0_47] : memref<16x128xf32, #tpu.memory_space<vmem>>, vector<1x128xf32>
      tpu.vector_store %arg11[%97, %c0_47], %94 {strides = array<i32>} : memref<16x128xf32, #tpu.memory_space<vmem>>, vector<1x128xf32>,
      scf.yield %84, %94 : vector<1x128xf32>, vector<1x128xf32>
    }
    %c0_30 = arith.constant 0 : index
    %c0_31 = arith.constant 0 : index
    %60 = vector.load %arg8[%c0_30, %c0_31] : memref<1x128xf32, #tpu.memory_space<vmem>>, vector<1x128xf32>
    %cst_32 = arith.constant 5.000000e-01 : f32
    %61 = vector.broadcast %cst_32 : f32 to vector<1x128xf32>
    %62 = arith.cmpf ogt, %60, %61 : vector<1x128xf32>
    %c0_33 = arith.constant 0 : index
    %c0_34 = arith.constant 0 : index
    %63 = vector.load %arg9[%c0_33, %c0_34] : memref<1x128xf32, #tpu.memory_space<vmem>>, vector<1x128xf32>
    %64 = arith.select %62, %63, %56 : vector<1x128xi1>, vector<1x128xf32>
    %c0_35 = arith.constant 0 : index
    %c0_36 = arith.constant 0 : index
    %65 = vector.load %arg12[%c0_35, %c0_36] : memref<1x128xf32, #tpu.memory_space<vmem>>, vector<1x128xf32>
    tpu.vector_store %arg12[%c0_35, %c0_36], %64 {strides = array<i32>} : memref<1x128xf32, #tpu.memory_space<vmem>>, vector<1x128xf32>,
    %c0_37 = arith.constant 0 : index
    %c0_38 = arith.constant 0 : index
    %66 = vector.load %arg7[%c0_37, %c0_38] : memref<1x128xf32, #tpu.memory_space<vmem>>, vector<1x128xf32>
    %67 = arith.subf %64, %66 : vector<1x128xf32>
    %c0_39 = arith.constant 0 : index
    %c0_40 = arith.constant 0 : index
    %68 = vector.load %arg13[%c0_39, %c0_40] : memref<1x128xf32, #tpu.memory_space<vmem>>, vector<1x128xf32>
    tpu.vector_store %arg13[%c0_39, %c0_40], %67 {strides = array<i32>} : memref<1x128xf32, #tpu.memory_space<vmem>>, vector<1x128xf32>,
    return
  }
  func.func @transform_0(%arg0: i32) -> i32 {
    %c0_i32 = arith.constant 0 : i32
    %c0_i32_0 = arith.constant 0 : i32
    return %c0_i32 : i32
  }
  func.func @transform_1(%arg0: i32) -> i32 {
    %c0_i32 = arith.constant 0 : i32
    %c0_i32_0 = arith.constant 0 : i32
    return %c0_i32 : i32
  }
  func.func @transform_2(%arg0: i32) -> (i32, i32) {
    %c0_i32 = arith.constant 0 : i32
    %c0_i32_0 = arith.constant 0 : i32
    return %c0_i32, %arg0 : i32, i32
  }
  func.func @transform_3(%arg0: i32) -> (i32, i32) {
    %c0_i32 = arith.constant 0 : i32
    %c0_i32_0 = arith.constant 0 : i32
    return %c0_i32, %arg0 : i32, i32
  }
  func.func @transform_4(%arg0: i32) -> (i32, i32) {
    %c0_i32 = arith.constant 0 : i32
    %c0_i32_0 = arith.constant 0 : i32
    return %c0_i32, %arg0 : i32, i32
  }
  func.func @transform_5(%arg0: i32) -> (i32, i32) {
    %c0_i32 = arith.constant 0 : i32
    %c0_i32_0 = arith.constant 0 : i32
    return %c0_i32, %arg0 : i32, i32
  }
  func.func @transform_6(%arg0: i32) -> (i32, i32) {
    %c0_i32 = arith.constant 0 : i32
    %c0_i32_0 = arith.constant 0 : i32
    return %c0_i32, %arg0 : i32, i32
  }
  func.func @transform_7(%arg0: i32) -> (i32, i32) {
    %c0_i32 = arith.constant 0 : i32
    %c0_i32_0 = arith.constant 0 : i32
    return %c0_i32, %arg0 : i32, i32
  }
  func.func @transform_8(%arg0: i32) -> (i32, i32) {
    %c0_i32 = arith.constant 0 : i32
    %c0_i32_0 = arith.constant 0 : i32
    return %c0_i32, %arg0 : i32, i32
  }
  func.func @transform_9(%arg0: i32) -> (i32, i32) {
    %c0_i32 = arith.constant 0 : i32
    %c0_i32_0 = arith.constant 0 : i32
    return %c0_i32, %arg0 : i32, i32
  }
  func.func @transform_10(%arg0: i32) -> (i32, i32) {
    %c0_i32 = arith.constant 0 : i32
    %c0_i32_0 = arith.constant 0 : i32
    return %c0_i32, %arg0 : i32, i32
  }
  func.func @transform_11(%arg0: i32) -> (i32, i32) {
    %c0_i32 = arith.constant 0 : i32
    %c0_i32_0 = arith.constant 0 : i32
    return %c0_i32, %arg0 : i32, i32
  }
  func.func @transform_12(%arg0: i32) -> (i32, i32) {
    %c0_i32 = arith.constant 0 : i32
    %c0_i32_0 = arith.constant 0 : i32
    return %c0_i32, %arg0 : i32, i32
  }
}

</mosaic_0001>

<bundles_post_ra>
// kernel: tpu_custom_call.1
= control target key start
LH: loop header
LB: loop body
LE: loop exit
PB: predicated region body
PF: predicated region fallthrough
CT: control target
= control target key end

     0   :  { %18 = vsyncpa [#allocation6], 0  ;;  %s906_s0 = inlined_call_operand.hbm [shape: s32[2], index: 0, kind: input, shape index: {}]   ;;  %s907_s1 = inlined_call_operand.vmem [shape: f32[16], index: 1, kind: input, shape index: {}]   ;;  %s908_s2 = inlined_call_operand.hbm [shape: f32[16,128], index: 2, kind: input, shape index: {}]   ;;  %s909_s3 = inlined_call_operand.hbm [shape: f32[16,128], index: 3, kind: input, shape index: {}]   ;;  %s910_s4 = inlined_call_operand.hbm [shape: f32[16,128], index: 4, kind: input, shape index: {}]   ;;  %s911_s5 = inlined_call_operand.vmem [shape: f32[1,128], index: 5, kind: input, shape index: {}]   ;;  %s912_s6 = inlined_call_operand.vmem [shape: f32[1,128], index: 6, kind: input, shape index: {}]   ;;  %s913_s7 = inlined_call_operand.vmem [shape: f32[1,128], index: 7, kind: input, shape index: {}]   ;;  %s914_s8 = inlined_call_operand.vmem [shape: f32[1,128], index: 8, kind: input, shape index: {}]   ;;  %s915_s9 = inlined_call_operand.hbm [shape: f32[16,128], index: 9, kind: output, shape index: {0}]   ;;  %s916_s10 = inlined_call_operand.hbm [shape: f32[16,128], index: 10, kind: output, shape index: {1}]   ;;  %s917_s11 = inlined_call_operand.hbm [shape: f32[1,128], index: 11, kind: output, shape index: {2}]   ;;  %s918_s12 = inlined_call_operand.hbm [shape: f32[1,128], index: 12, kind: output, shape index: {3}]  }
   0x1   :  { %19 = vsyncpa [#allocation7], 0 }
   0x2   :  { %20 = vsyncpa [#allocation4], 0 }
   0x3   :  { %21 = vsyncpa [#allocation11], 0 }
   0x4   :  { %22 = vsyncpa [#allocation5], 0 }
   0x5   :  { %23 = vsyncpa [#allocation15], 0 }
   0x6   :  { %24 = vsyncpa [#allocation18], 0  ;;  %s647_s21 = smov [#allocation10]   ;;  %s39_s25 = sshll.u32 %s907_s1, 4  ;;  %s729_s25 = int_to_ptr.vmem [resolvable:$true] %s39_s25 }
   0x7   :  { %s60_s22 = sshll.u32 %s647_s21, 4  ;;  %s433_s28 = scalar_lea.hbm %s909_s3, 256  ;;  %s61_s22 = int_to_ptr.vmem [resolvable:$true] %s60_s22 }
   0x8   :  { %p434_p0 = scmp.ne.s32.totalorder %s909_s3, %s433_s28  ;;  %p437_p1 = scmp.lt.u32.totalorder %s433_s28, %s909_s3 }
   0xa   :  { %p439_p2 = pnand %p437_p1, %p434_p0 }
   0xc   :  { %442 = shalt.err (!%p439_p2)
}
   0xd   :  { %s443_s15 = scalar_lea.vmem %s61_s22, 256  ;;  %p448_p4 = scmp.lt.s32.totalorder %s61_s22, %s61_s22 }
   0xe   :  { %p444_p3 = scmp.ne.s32.totalorder %s61_s22, %s443_s15  ;;  %p449_p5 = scmp.lt.s32.totalorder %s443_s15, %s443_s15 }
  0x10   :  { %p450_p6 = por %p449_p5, %p448_p4 }
  0x12   :  { %p451_p7 = pnand %p450_p6, %p444_p3 }
  0x14   :  { %454 = shalt.err (!%p451_p7)
}
  0x15   :  { %s648_s1 = smov 128   ;;  %s649_s16 = smov 8  }
  0x16   :  { %66 = dma.hbm_to_vmem [thread:$0]  %s909_s3, 256, %s61_s22, [#allocation11], %s648_s1, %s648_s1, %s649_s16  }
  0x17   :  { %s455_s21 = scalar_lea.hbm %s906_s0, 16 }
  0x18   :  { %p456_p8 = scmp.ne.s32.totalorder %s906_s0, %s455_s21  ;;  %p459_p9 = scmp.lt.u32.totalorder %s455_s21, %s906_s0 }
  0x1a   :  { %p461_p10 = pnand %p459_p9, %p456_p8 }
  0x1c   :  { %464 = shalt.err (!%p461_p10)
}
  0x1d   :  { %s650_s28 = smov [#allocation3]   ;;  %s465_s3 = scalar_lea.vmem %s729_s25, 16 }
  0x1e   :  { %32 = dma.hbm_to_smem %s906_s0, 16, %s650_s28, [#allocation6]  }
  0x1f   :  { %p466_p11 = scmp.ne.s32.totalorder %s729_s25, %s465_s3  ;;  %p470_p12 = scmp.lt.s32.totalorder %s729_s25, %s729_s25 }
  0x20   :  { %p471_p13 = scmp.lt.s32.totalorder %s465_s3, %s465_s3 }
  0x22   :  { %p472_p0 = por %p471_p13, %p470_p12 }
  0x24   :  { %p473_p1 = pnand %p472_p0, %p466_p11 }
  0x26   :  { %476 = shalt.err (!%p473_p1)
}
  0x27   :  { %s651_s22 = smov [#allocation8]   ;;  %s652_s13 = smov [#allocation9]  }
  0x28   :  { %42 = dma.vmem_to_smem %s729_s25, 16, %s651_s22, [#allocation7]  }
  0x29   :  { %s48_s14 = sshll.u32 %s652_s13, 4  ;;  %s653_s15 = smov [#allocation12]   ;;  %s49_s14 = int_to_ptr.vmem [resolvable:$true] %s48_s14 }
  0x2a   :  { %s72_s17 = sshll.u32 %s653_s15, 4  ;;  %s477_s0 = scalar_lea.hbm %s908_s2, 256  ;;  %s73_s17 = int_to_ptr.vmem [resolvable:$true] %s72_s17 }
  0x2b   :  { %p478_p2 = scmp.ne.s32.totalorder %s908_s2, %s477_s0  ;;  %p481_p3 = scmp.lt.u32.totalorder %s477_s0, %s908_s2 }
  0x2d   :  { %p483_p4 = pnand %p481_p3, %p478_p2 }
  0x2f   :  { %486 = shalt.err (!%p483_p4)
}
  0x30   :  { %s487_s25 = scalar_lea.vmem %s49_s14, 256  ;;  %p492_p6 = scmp.lt.s32.totalorder %s49_s14, %s49_s14 }
  0x31   :  { %p488_p5 = scmp.ne.s32.totalorder %s49_s14, %s487_s25  ;;  %p493_p7 = scmp.lt.s32.totalorder %s487_s25, %s487_s25 }
  0x33   :  { %p494_p8 = por %p493_p7, %p492_p6 }
  0x35   :  { %p495_p9 = pnand %p494_p8, %p488_p5 }
  0x37   :  { %498 = shalt.err (!%p495_p9)
}
  0x38   :  { %54 = dma.hbm_to_vmem [thread:$0]  %s908_s2, 256, %s49_s14, [#allocation4], %s648_s1, %s648_s1, %s649_s16  }
  0x39   :  { %s499_s30 = scalar_lea.hbm %s910_s4, 256 }
  0x3a   :  { %p500_p10 = scmp.ne.s32.totalorder %s910_s4, %s499_s30  ;;  %p503_p11 = scmp.lt.u32.totalorder %s499_s30, %s910_s4 }
  0x3c   :  { %p505_p12 = pnand %p503_p11, %p500_p10 }
  0x3e   :  { %508 = shalt.err (!%p505_p12)
}
  0x3f   :  { %s509_s18 = scalar_lea.vmem %s73_s17, 256  ;;  %p514_p0 = scmp.lt.s32.totalorder %s73_s17, %s73_s17 }
  0x40   :  { %p510_p13 = scmp.ne.s32.totalorder %s73_s17, %s509_s18  ;;  %p515_p1 = scmp.lt.s32.totalorder %s509_s18, %s509_s18 }
  0x42   :  { %p516_p2 = por %p515_p1, %p514_p0 }
  0x44   :  { %p517_p3 = pnand %p516_p2, %p510_p13 }
  0x46   :  { %520 = shalt.err (!%p517_p3)
}
  0x47   :  { %78 = dma.hbm_to_vmem [thread:$0]  %s910_s4, 256, %s73_s17, [#allocation11], %s648_s1, %s648_s1, %s649_s16  }
  0x48   :  { %621 = dma.done.wait [#allocation6], 16  }
  0x49   :  { %622 = vsyncadd [#allocation6], 4294967280 }
  0x4a   :  { %623 = dma.done.wait [#allocation7], 16  }
  0x4b   :  { %624 = vsyncadd [#allocation7], 4294967280 }
  0x4c   :  { %625 = dma.done.wait [#allocation4], 256  }
  0x4d   :  { %626 = vsyncadd [#allocation4], 4294967040 }
  0x4e   :  { %627 = dma.done.wait [#allocation11], 512  }
  0x4f   :  { %628 = vsyncadd [#allocation11], 4294966784 }
  0x50   :  { %102 = sfence }
  0x51   :  { %v109_v0 = vld [vmem:[%s911_s5] sm:$0x1]  ;;  %v116_v1 = vlaneseq  ;;  %v654_v2 = vmov 0.0   ;;  %s796_s4 = sld [smem:[#allocation3]]   ;;  %v655_v4 = vmov 0   ;;  %s356_s17 = sld [smem:[#allocation3 + $0x1]] }
  0x52   :  { %105 = vst [vmem:[#allocation13] sm:$0xff] %v654_v2  ;;  %106 = vst [vmem:[#allocation13 + $0x8] sm:$0xff] %v654_v2  ;;  %vm110_vm0 = vcmp.gt.f32.partialorder %v109_v0, 0.5  ;;  %v111_v7 = vld [vmem:[#allocation10] sm:$0xff]  ;;  %v112_v9 = vld [vmem:[#allocation10 + $0x8] sm:$0xff]  ;;  %vm180_vm7 = vcmask 1046528  }
  0x53   :  { %107 = vst [vmem:[#allocation14] sm:$0xff] %v654_v2  ;;  %108 = vst [vmem:[#allocation14 + $0x8] sm:$0xff] %v654_v2  ;;  %v798_v3 = vshrl.u32 %v116_v1, 7  ;;  %v115_v5 = vsel %vm110_vm0, 1, %v655_v4  ;;  %v113_v10 = vld [vmem:[#allocation12] sm:$0xff]  ;;  %v114_v11 = vld [vmem:[#allocation12 + $0x8] sm:$0xff] }
  0x54   :  { %v656_v12 = vmov -1e+30   ;;  %v157_v19 = vld [vmem:[#allocation9] sm:$0x1]  ;;  %v168_v47 = vld [vmem:[#allocation9 + $0x1] sm:$0xff] }
  0x55   :  { %v118_v6 = vsub.s32 0, %v798_v3  ;;  %v174_v45 = vadd.s32 8, %v798_v3  ;;  %v169_v50 = vld [vmem:[#allocation9 + $0x9] sm:$0x7f] }
  0x57   :  { %v119_v8 = vrot.slane %v115_v5, %v118_v6  ;;  %s365_s5 = scalar_lea.vmem [#allocation14], %s796_s4  ;;  %p158_p4 = scmp.eq.s32.totalorder %s356_s17, 0 }
  0x58   :  { %367 = vst [vmem:[%s365_s5 - $0x1] sm:$0x1] %v656_v12  ;;  %s362_s21 = scalar_lea.vmem [#allocation13], %s796_s4  ;;  %s357_s23 = sadd.s32 4294967295, %s796_s4 }
  0x59   :  { %vm120_vm1 = vcmp.eq.s32.totalorder %v119_v8, 1  ;;  %s159_s20 = scalar_select %p158_p4, 1, 0  ;;  %v175_v43 = vstv %s357_s23 }
  0x5a   :  { %v121_v13 = vsel %vm120_vm1, %v111_v7, -1e+30  ;;  %v122_v14 = vsel %vm120_vm1, %v112_v9, -1e+30  ;;  %vm176_vm5 = vcmp.ge.s32.totalorder %v798_v3, %v175_v43  ;;  %vm177_vm6 = vcmp.ge.s32.totalorder %v174_v45, %v175_v43  ;;  %p346_p5 = scmp.ge.s32.totalorder %s796_s4, 16 }
  0x5b   :  { %v125_v15 = vsub.f32 %v113_v10, %v121_v13  ;;  %v126_v16 = vsub.f32 %v114_v11, %v122_v14  ;;  %v160_v20 = vstv %s159_s20  ;;  %v123_v38 = vmax.f32 %v113_v10, %v121_v13 }
  0x5c   :  { %vm161_vm2 = vcmp.eq.s32.totalorder %v160_v20, 1  ;;  %v124_v42 = vmax.f32 %v114_v11, %v122_v14 }
  0x5d   :  { %v127_v17 = vand.u32 2147483647, %v125_v15  ;;  %v128_v18 = vand.u32 2147483647, %v126_v16  ;;  %v804_v23 = vsel %vm161_vm2, %v157_v19, -1e+30  }
  0x5e   :  { %364 = vst [vmem:[%s362_s21 - $0x1] sm:$0x1] %v804_v23 }
  0x5f   :  { %v129_v21 = vsub.f32 0.0, %v127_v17  ;;  %v130_v22 = vsub.f32 0.0, %v128_v18 }
  0x61   :  { %v131_v24 = vmul.f32 1.442695, %v129_v21  ;;  %v133_v25 = vmul.f32 1.442695, %v130_v22 }
  0x63   :  { %409 = vpow2.f32 %v131_v24  ;;  %v635_v24 = vmov (!%p346_p5), -1e+30  }
  0x64   :  { %411 = vpow2.f32 %v133_v25  ;;  %v639_v25 = vmov (!%p346_p5), %v804_v23  }
  0x6d   :  { %v410_v26 = vpop.eup %409 }
  0x6e   :  { %v412_v27 = vpop.eup %411  ;;  %v135_v28 = vadd.f32 1.0, %v410_v26  ;;  %v138_v30 = vmul.f32 -0.5, %v410_v26  ;;  %v141_v33 = vand.u32 2147483647, %v410_v26 }
  0x6f   :  { %v144_v29 = vadd.f32 1.0, %v412_v27  ;;  %v147_v31 = vmul.f32 -0.5, %v412_v27  ;;  %v150_v35 = vand.u32 2147483647, %v412_v27 }
  0x70   :  { %413 = vlog2.f32 %v135_v28  ;;  %v139_v32 = vadd.f32 1.0, %v138_v30  ;;  %vm142_vm3 = vcmp.lt.f32.partialorder %v141_v33, 0.0004427343 }
  0x71   :  { %415 = vlog2.f32 %v144_v29  ;;  %v148_v34 = vadd.f32 1.0, %v147_v31  ;;  %vm151_vm4 = vcmp.lt.f32.partialorder %v150_v35, 0.0004427343 }
  0x72   :  { %v140_v36 = vmul.f32 %v410_v26, %v139_v32 }
  0x73   :  { %v149_v39 = vmul.f32 %v412_v27, %v148_v34 }
  0x7a   :  { %v414_v37 = vpop.eup %413 }
  0x7b   :  { %v416_v40 = vpop.eup %415  ;;  %v137_v41 = vmul.f32 0.6931472, %v414_v37 }
  0x7c   :  { %v146_v44 = vmul.f32 0.6931472, %v416_v40 }
  0x7d   :  { %v143_v46 = vsel %vm142_vm3, %v140_v36, %v137_v41 }
  0x7e   :  { %v153_v48 = vadd.f32 %v143_v46, %v123_v38  ;;  %v152_v49 = vsel %vm151_vm4, %v149_v39, %v146_v44 }
  0x7f   :  { %v154_v51 = vadd.f32 %v152_v49, %v124_v42 }
  0x80   :  { %155 = vst [vmem:[#allocation2] sm:$0xff] %v153_v48  ;;  %v170_v52 = vadd.f32 %v168_v47, %v153_v48 }
  0x81   :  { %156 = vst [vmem:[#allocation2 + $0x8] sm:$0xff] %v154_v51  ;;  %v171_v53 = vadd.f32 %v169_v50, %v154_v51 }
  0x82   :  { %v178_v54 = vsel %vm176_vm5, %v170_v52, -1e+30 }
  0x83   :  { %v179_v55 = vsel %vm177_vm6, %v171_v53, -1e+30 }
  0x84   :  { %v181_v56 = vsel %vm180_vm7, %v179_v55, -inf }
  0x85   :  { %v182_v57 = vmax.f32 %v178_v54, %v181_v56 }
  0x87   :  { %v183_v58 = vrot.slane %v182_v57, 4 }
  0x89   :  { %v184_v59 = vmax.f32 %v182_v57, %v183_v58 }
  0x8b   :  { %v185_v60 = vrot.slane %v184_v59, 2 }
  0x8d   :  { %v186_v61 = vmax.f32 %v184_v59, %v185_v60 }
  0x8f   :  { %v187_v62 = vrot.slane %v186_v61, 1 }
  0x91   :  { %v188_v63 = vmax.f32 %v186_v61, %v187_v62 }
  0x93   :  { %v189_v0 = vmax.f32 %v188_v63, %v804_v23 }
  0x95   :  { %v193_v1 = vrot.slane %v189_v0, %v118_v6  ;;  %v208_v8 = vsub.f32 %v804_v23, %v189_v0 }
  0x97   :  { %v194_v2 = vsub.f32 %v178_v54, %v193_v1  ;;  %v195_v4 = vsub.f32 %v179_v55, %v193_v1  ;;  %v209_v10 = vmul.f32 1.442695, %v208_v8 }
  0x99   :  { %v196_v5 = vmul.f32 1.442695, %v194_v2  ;;  %v198_v7 = vmul.f32 1.442695, %v195_v4 }
  0x9b   :  { %417 = vpow2.f32 %v196_v5 }
  0x9c   :  { %419 = vpow2.f32 %v198_v7 }
  0x9d   :  { %421 = vpow2.f32 %v209_v10 }
  0xa5   :  { %v418_v9 = vpop.eup %417 }
  0xa6   :  { %v420_v11 = vpop.eup %419 }
  0xa7   :  { %v200_v12 = vsel %vm180_vm7, %v420_v11, 0.0  ;;  %v422_v17 = vpop.eup %421 }
  0xa8   :  { %v201_v13 = vadd.f32 %v418_v9, %v200_v12 }
  0xaa   :  { %v202_v14 = vrot.slane %v201_v13, 4 }
  0xac   :  { %v203_v15 = vadd.f32 %v202_v14, %v201_v13 }
  0xae   :  { %v204_v16 = vrot.slane %v203_v15, 2 }
  0xb0   :  { %v205_v3 = vadd.f32 %v204_v16, %v203_v15 }
  0xb2   :  { %v206_v6 = vrot.slane %v205_v3, 1 }
  0xb4   :  { %v207_v18 = vadd.f32 %v206_v6, %v205_v3 }
  0xb6   :  { %v211_v19 = vadd.f32 %v422_v17, %v207_v18 }
  0xb8   :  { %423 = vlog2.f32 %v211_v19 }
  0xbf   :  { %349 = sbr.rel (%p346_p5) target bundleno = 240 (0xf0), region = 107 }
  0xc2   :  { %v424_v20 = vpop.eup %423 }
  0xc3   :  { %v213_v21 = vmul.f32 0.6931472, %v424_v20 }
  0xc5   :  { %v817_v22 = vadd.f32 %v213_v21, %v189_v0 }
  0xc6 LB: > { %v247_v26 = vsub.f32 %v637_v24, %v641_v25  ;;  %s368_s24 = scalar_lea.vmem [#allocation2], %s645_s4  ;;  %s228_s25 = sld [smem:[#allocation8 + %s645_s4]]  ;;  %v246_v46 = vmax.f32 %v637_v24, %v641_v25  ;;  %s645_s4 = sphi %s796_s4, %s218_s4   ;;  %v641_v25 = vphi %v639_v25, %v245_v25   ;;  %v637_v24 = vphi %v635_v24, %v263_v24  }
  0xc7   : > { %v370_v27 = vld [vmem:[%s368_s24 - $0x1] sm:$0x1]  ;;  %s226_s26 = scalar_lea.vmem [#allocation9], %s645_s4  ;;  %s266_s27 = scalar_lea.vmem [#allocation14], %s645_s4 }
  0xc8   : > { %v230_v28 = vsub.f32 %v641_v25, %v370_v27  ;;  %v248_v29 = vand.u32 2147483647, %v247_v26  ;;  %v229_v50 = vmax.f32 %v641_v25, %v370_v27  ;;  %v227_v55 = vld [vmem:[%s226_s26] sm:$0x1]  ;;  %s264_s28 = scalar_lea.vmem [#allocation13], %s645_s4  ;;  %s218_s4 = sadd.s32 1, %s645_s4  }
  0xc9   : > { %p217_p6 = scmp.ge.s32.totalorder %s218_s4, 16 }
  0xca   : > { %v231_v30 = vand.u32 2147483647, %v230_v28  ;;  %v249_v31 = vsub.f32 0.0, %v248_v29 }
  0xcc   : > { %v232_v32 = vsub.f32 0.0, %v231_v30  ;;  %v250_v23 = vmul.f32 1.442695, %v249_v31  ;;  %v262_v53 = vstv %s228_s25 }
  0xce   : > { %v233_v33 = vmul.f32 1.442695, %v232_v32  ;;  %425 = vpow2.f32 %v250_v23 }
  0xd0   : > { %427 = vpow2.f32 %v233_v33 }
  0xd8   : > { %v426_v34 = vpop.eup %425 }
  0xd9   : > { %v252_v35 = vadd.f32 1.0, %v426_v34  ;;  %v255_v38 = vmul.f32 -0.5, %v426_v34  ;;  %v258_v41 = vand.u32 2147483647, %v426_v34 }
  0xda   : > { %v428_v36 = vpop.eup %427 }
  0xdb   : > { %v235_v37 = vadd.f32 1.0, %v428_v36  ;;  %429 = vlog2.f32 %v252_v35  ;;  %v238_v39 = vmul.f32 -0.5, %v428_v36  ;;  %v256_v40 = vadd.f32 1.0, %v255_v38 }
  0xdc   : > { %v241_v43 = vand.u32 2147483647, %v428_v36  ;;  %vm259_vm8 = vcmp.lt.f32.partialorder %v258_v41, 0.0004427343 }
  0xdd   : > { %431 = vlog2.f32 %v235_v37  ;;  %v239_v42 = vadd.f32 1.0, %v238_v39  ;;  %v257_v44 = vmul.f32 %v426_v34, %v256_v40 }
  0xde   : > { %vm242_vm9 = vcmp.lt.f32.partialorder %v241_v43, 0.0004427343 }
  0xdf   : > { %v240_v47 = vmul.f32 %v428_v36, %v239_v42 }
  0xe5   : > { %v430_v45 = vpop.eup %429 }
  0xe6   : > { %v254_v48 = vmul.f32 0.6931472, %v430_v45 }
  0xe7   : > { %v432_v49 = vpop.eup %431 }
  0xe8   : > { %v237_v51 = vmul.f32 0.6931472, %v432_v49  ;;  %v260_v52 = vsel %vm259_vm8, %v257_v44, %v254_v48 }
  0xe9   : > { %v261_v54 = vadd.f32 %v260_v52, %v246_v46  ;;  %220 = sbr.rel (!%p217_p6) target bundleno = 198 (0xc6), region = 113 }
  0xea   : > { %v243_v56 = vsel %vm242_vm9, %v240_v47, %v237_v51 }
  0xeb   : > { %v244_v57 = vadd.f32 %v243_v56, %v229_v50  ;;  %v263_v24 = vadd.f32 %v262_v53, %v261_v54  }
  0xed   : > { %v245_v25 = vadd.f32 %v244_v57, %v227_v55   ;;  %267 = vst [vmem:[%s266_s27] sm:$0x1] %v263_v24 }
  0xef   : > { %265 = vst [vmem:[%s264_s28] sm:$0x1] %v245_v25 }
  0xf0 PF:  { %v268_v58 = vld [vmem:[%s913_s7] sm:$0x1]  ;;  %s657_s18 = smov [#allocation14]   ;;  %s658_s14 = smov [#allocation13]  }
  0xf1   :  { %v270_v59 = vld [vmem:[%s914_s8] sm:$0x1]  ;;  %vm269_vm10 = vcmp.gt.f32.partialorder %v268_v58, 0.5  ;;  %s293_s2 = sshll.u32 %s657_s18, 4  ;;  %s281_s19 = sshll.u32 %s658_s14, 4  ;;  %s294_s2 = int_to_ptr.vmem [resolvable:$true] %s293_s2  ;;  %s845_s19 = int_to_ptr.vmem [resolvable:$true] %s281_s19 }
  0xf2   :  { %v273_v60 = vld [vmem:[%s912_s6] sm:$0x1]  ;;  %v271_v61 = vsel %vm269_vm10, %v270_v59, %v817_v22  ;;  %s521_s7 = scalar_lea.vmem %s294_s2, 256  ;;  %p526_p8 = scmp.lt.s32.totalorder %s294_s2, %s294_s2 }
  0xf3   :  { %272 = vst [vmem:[#allocation16] sm:$0x1] %v271_v61  ;;  %v274_v62 = vsub.f32 %v271_v61, %v273_v60  ;;  %p522_p7 = scmp.ne.s32.totalorder %s294_s2, %s521_s7  ;;  %p527_p9 = scmp.lt.s32.totalorder %s521_s7, %s521_s7 }
  0xf5   :  { %p528_p10 = por %p527_p9, %p526_p8 }
  0xf7   :  { %p529_p11 = pnand %p528_p10, %p522_p7 }
  0xf9   :  { %532 = shalt.err (!%p529_p11)
}
  0xfa   :  { %s533_s0 = scalar_lea.hbm %s916_s10, 256 }
  0xfb   :  { %p534_p12 = scmp.ne.s32.totalorder %s916_s10, %s533_s0  ;;  %p537_p13 = scmp.lt.u32.totalorder %s533_s0, %s916_s10 }
  0xfd   :  { %p539_p0 = pnand %p537_p13, %p534_p12 }
  0xff   :  { %542 = shalt.err (!%p539_p0)
}
 0x100   :  { %299 = dma.vmem_to_hbm [thread:$0]  %s294_s2, 256, %s916_s10, [#allocation15], %s648_s1, %s648_s1, %s649_s16   ;;  %275 = vst [vmem:[#allocation17] sm:$0x1] %v274_v62 }
 0x101   :  { %s543_s24 = scalar_lea.vmem %s845_s19, 256  ;;  %p548_p2 = scmp.lt.s32.totalorder %s845_s19, %s845_s19 }
 0x102   :  { %p544_p1 = scmp.ne.s32.totalorder %s845_s19, %s543_s24  ;;  %p549_p3 = scmp.lt.s32.totalorder %s543_s24, %s543_s24 }
 0x104   :  { %p550_p4 = por %p549_p3, %p548_p2 }
 0x106   :  { %p551_p5 = pnand %p550_p4, %p544_p1 }
 0x108   :  { %554 = shalt.err (!%p551_p5)
}
 0x109   :  { %s555_s27 = scalar_lea.hbm %s915_s9, 256 }
 0x10a   :  { %p556_p6 = scmp.ne.s32.totalorder %s915_s9, %s555_s27  ;;  %p559_p7 = scmp.lt.u32.totalorder %s555_s27, %s915_s9 }
 0x10c   :  { %p561_p8 = pnand %p559_p7, %p556_p6 }
 0x10e   :  { %564 = shalt.err (!%p561_p8)
}
 0x10f   :  { %287 = dma.vmem_to_hbm [thread:$0]  %s845_s19, 256, %s915_s9, [#allocation5], %s648_s1, %s648_s1, %s649_s16  }
 0x110   :  { %s659_s13 = smov [#allocation16]   ;;  %s660_s18 = smov [#allocation17]  }
 0x111   :  { %s306_s15 = sshll.u32 %s659_s13, 4  ;;  %s316_s2 = sshll.u32 %s660_s18, 4  ;;  %s307_s15 = int_to_ptr.vmem [resolvable:$true] %s306_s15  ;;  %s317_s2 = int_to_ptr.vmem [resolvable:$true] %s316_s2 }
 0x112   :  { %s565_s14 = scalar_lea.vmem %s307_s15, 16  ;;  %s569_s7 = scalar_lea.vmem %s307_s15, 32 }
 0x113   :  { %p566_p9 = scmp.ne.s32.totalorder %s307_s15, %s565_s14  ;;  %p570_p10 = scmp.lt.s32.totalorder %s307_s15, %s307_s15 }
 0x114   :  { %p571_p11 = scmp.lt.s32.totalorder %s569_s7, %s565_s14 }
 0x116   :  { %p572_p12 = por %p571_p11, %p570_p10 }
 0x118   :  { %p573_p13 = pnand %p572_p12, %p566_p9 }
 0x11a   :  { %576 = shalt.err (!%p573_p13)
}
 0x11b   :  { %s577_s0 = scalar_lea.hbm %s917_s11, 16 }
 0x11c   :  { %p578_p0 = scmp.ne.s32.totalorder %s917_s11, %s577_s0  ;;  %p581_p1 = scmp.lt.u32.totalorder %s577_s0, %s917_s11 }
 0x11e   :  { %p583_p2 = pnand %p581_p1, %p578_p0 }
 0x120   :  { %586 = shalt.err (!%p583_p2)
}
 0x121   :  { %309 = dma.vmem_to_hbm [thread:$0]  %s307_s15, 16, %s917_s11, [#allocation15]  }
 0x122   :  { %s587_s5 = scalar_lea.vmem %s317_s2, 16  ;;  %s591_s20 = scalar_lea.vmem %s317_s2, 32 }
 0x123   :  { %p588_p3 = scmp.ne.s32.totalorder %s317_s2, %s587_s5  ;;  %p592_p4 = scmp.lt.s32.totalorder %s317_s2, %s317_s2 }
 0x124   :  { %p593_p5 = scmp.lt.s32.totalorder %s591_s20, %s587_s5 }
 0x126   :  { %p594_p6 = por %p593_p5, %p592_p4 }
 0x128   :  { %p595_p7 = pnand %p594_p6, %p588_p3 }
 0x12a   :  { %598 = shalt.err (!%p595_p7)
}
 0x12b   :  { %s599_s24 = scalar_lea.hbm %s918_s12, 16 }
 0x12c   :  { %p600_p8 = scmp.ne.s32.totalorder %s918_s12, %s599_s24  ;;  %p603_p9 = scmp.lt.u32.totalorder %s599_s24, %s918_s12 }
 0x12e   :  { %p605_p10 = pnand %p603_p9, %p600_p8 }
 0x130   :  { %608 = shalt.err (!%p605_p10)
}
 0x131   :  { %319 = dma.vmem_to_hbm [thread:$0]  %s317_s2, 16, %s918_s12, [#allocation18]  }
 0x132   :  { %629 = dma.done.wait [#allocation5], 256  }
 0x133   :  { %630 = vsyncadd [#allocation5], 4294967040 }
 0x134   :  { %631 = dma.done.wait [#allocation15], 272  }
 0x135   :  { %632 = vsyncadd [#allocation15], 4294967024 }
 0x136   :  { %633 = dma.done.wait [#allocation18], 16  }
 0x137   :  { %634 = vsyncadd [#allocation18], 4294967280 }
 0x138   :  { %332 = vsyncpa [#allocation4], 1 }
 0x139   :  { %333 = vsyncpa [#allocation11], 1 }
 0x13a   :  { %334 = vsyncpa [#allocation5], 1 }
 0x13b   :  { %335 = vsyncpa [#allocation15], 1 }
 0x13c   :  { %336 = vsyncpa [#allocation18], 1 }
 0x13d   :  { %337 = vsyncpa [#allocation6], 1 }
 0x13e   :  { %338 = vsyncpa [#allocation7], 1 }

</bundles_post_ra>
